<compile_context>
chip_gen: v6e
topology: v6e:2x2x1
jax: 0.10.0
libtpu: 0.0.40
codegen_flags: <defaults>
</compile_context>

<pallas_src>
import jax
import jax.numpy as jnp
from jax.experimental import pallas as pl
from jax.experimental.pallas import tpu as pltpu


def _round_up(n: int, m: int) -> int:
    return ((int(n) + m - 1) // m) * m


def _make_gps_mlp_kernel(num_layers: int, in_dim: int):
    """Kernel body, transposed (feature-major) layout.

    Refs (in order):
      x_ref:   (in_dim, bt)          input tile, batch on lanes.
      W_i, b_i interleaved: W_i (out, in) PyTorch layout, b_i (out, 1).
      out_ref: (out_dim, bt)         lane-dense output tile.
    """

    def kernel(x_ref, *wb_and_out_refs):
        out_ref = wb_and_out_refs[-1]
        wb = wb_and_out_refs[:-1]                      # (W0, b0, W1, b1, ...)

        x = x_ref[...].astype(jnp.float32)             # (in_dim, bt)

        # ---- Layer 0: tiny-K contraction done on the VPU (broadcast FMAs). ----
        # A K=3 matmul would waste >97% of the MXU array; three FMAs on (H, bt)
        # are trivial VPU work in a slot with slack.
        w0 = wb[0][...].astype(jnp.float32)            # (H0, in_dim), divisor folded in
        b0 = wb[1][...].astype(jnp.float32)            # (H0, 1) -> lane broadcast
        if in_dim <= 8:
            h = b0
            for k in range(in_dim):
                h = h + w0[:, k:k + 1] * x[k:k + 1, :]
        else:
            h = jnp.dot(w0, x, preferred_element_type=jnp.float32) + b0
        if num_layers > 1:
            h = jnp.maximum(h, 0.0)                    # ReLU on hidden layers only

        # ---- Remaining layers on the MXU (operands in the weights' dtype). ----
        for li in range(1, num_layers):
            w = wb[2 * li][...]                        # (out, in), f32 or bf16
            b = wb[2 * li + 1][...].astype(jnp.float32)
            h = jnp.dot(w, h.astype(w.dtype),
                        preferred_element_type=jnp.float32) + b
            if li < num_layers - 1:
                h = jnp.maximum(h, 0.0)

        out_ref[...] = h.astype(out_ref.dtype)

    return kernel


def _choose_batch_tile(batch_tile, B, in_dim, out_dim, max_hidden):
    """Pick a lane-dense tile that amortizes per-step overhead, fits the default
    scoped-VMEM budget on every generation, and gives >=2 grid steps for v7x."""
    pad8 = lambda n: _round_up(max(int(n), 1), 8)
    bt = _round_up(max(int(batch_tile), 128), 128)     # multiple of 128, always
    bp_min = _round_up(max(int(B), 1), 128)
    bt = min(bt, bp_min)
    # VMEM budget ~12 MiB: 2x double-buffered x tile + 2x output tile + ~3 staged
    # activations of the widest layer (compiler scratch).  Fits v5e's 16 MiB
    # scoped default and v7x's 32 MiB scoped limit with headroom.
    per_lane_bytes = 4 * (2 * pad8(in_dim) + 2 * pad8(out_dim) + 3 * pad8(max_hidden))
    bt_cap = max(128, ((12 * 1024 * 1024) // per_lane_bytes) // 128 * 128)
    bt = min(bt, bt_cap)
    # v7x has 2 TensorCores: prefer at least 2 "parallel" grid steps when possible.
    if -(-bp_min // bt) < 2 and bp_min >= 256:
        bt = _round_up(-(-bp_min // 2), 128)
    return bt


def _gps_mlp_feature_major(xT, divisor, params, *, batch_tile, compute_dtype):
    """Core path: x feature-major (D, B) in, y feature-major (out_dim, B) out."""
    D, B = xT.shape
    num_layers = len(params)
    out_dim = params[-1][0].shape[0]
    div = jnp.asarray(divisor, jnp.float32).reshape(1, D)

    # Fold the divisor into layer 0: W0 @ (x/d) == (W0/d) @ x.  Hidden/output
    # weights optionally cast once (wrapper-side) to the MXU compute dtype.
    w0, b0 = params[0]
    folded = [(w0.astype(jnp.float32) / div, b0.reshape(-1, 1).astype(jnp.float32))]
    for (w, b) in params[1:]:
        folded.append((w.astype(compute_dtype), b.reshape(-1, 1).astype(jnp.float32)))

    max_hidden = max(w.shape[0] for (w, _) in folded)
    bt = _choose_batch_tile(batch_tile, B, D, out_dim, max_hidden)
    Bp = _round_up(B, bt)

    xT = xT.astype(jnp.float32)
    if Bp != B:
        xT = jnp.pad(xT, ((0, 0), (0, Bp - B)))        # fuses with producer under jit

    # Flatten params; constant index_maps -> Pallas keeps the blocks resident.
    flat_args, flat_specs = [], []
    for (w, b) in folded:
        flat_args += [w, b]
        flat_specs += [pl.BlockSpec(w.shape, lambda i: (0, 0)),
                       pl.BlockSpec(b.shape, lambda i: (0, 0))]

    kernel = _make_gps_mlp_kernel(num_layers, D)
    yT = pl.pallas_call(
        kernel,
        out_shape=jax.ShapeDtypeStruct((out_dim, Bp), jnp.float32),
        grid_spec=pltpu.PrefetchScalarGridSpec(
            num_scalar_prefetch=0,
            grid=(Bp // bt,),
            in_specs=[pl.BlockSpec((D, bt), lambda i: (0, i))] + flat_specs,
            out_specs=pl.BlockSpec((out_dim, bt), lambda i: (0, i)),
        ),
        compiler_params=pltpu.CompilerParams(
            dimension_semantics=("parallel",),
        ),
    )(xT, *flat_args)

    return yT if Bp == B else yT[:, :B]


def gps_mlp_forward(x, divisor, params, *, batch_tile=8192,
                    compute_dtype=jnp.float32, feature_major=False):
    """GPSMLP forward with a Pallas TPU kernel.

    Args:
      x:  (B, 3) f32 input, or (3, B) if feature_major=True.
      divisor: (3,) or (1, 3) f32 divisor ([1000, 100, 1000]).
      params: list of (W, b) with PyTorch Linear layout: W (out, in), b (out,) or (out, 1).
      batch_tile: requested rows per grid step; rounded to a multiple of 128 and
        capped by a per-generation-safe VMEM budget internally.
      compute_dtype: dtype of the hidden/output matmul operands (f32 or bf16);
        accumulation is always f32.
      feature_major: if True, skip all wrapper transposes (x is (3, B) and the
        result is returned as (out_dim, B)).
    Returns:
      (y, None) mirroring the PyTorch module's return value.
    """
    if feature_major:
        yT = _gps_mlp_feature_major(x, divisor, params, batch_tile=batch_tile,
                                    compute_dtype=compute_dtype)
        return yT, None

    # Batch-major path: one transpose in, one transpose out (both fuse with
    # neighbors under jit).  Prefer feature_major=True when the surrounding
    # pipeline can keep the transposed layout end-to-end.
    yT = _gps_mlp_feature_major(jnp.transpose(x), divisor, params,
                                batch_tile=batch_tile, compute_dtype=compute_dtype)
    return jnp.transpose(yT), None


def build_mlp_params(key, input_dim, hidden_dim, output_dim, hidden_depth):
    """PyTorch-Linear-style uniform init; weights (out, in), bias (out, 1)."""
    if hidden_depth == 0:
        dims = [(input_dim, output_dim)]
    else:
        dims = [(input_dim, hidden_dim)]
        dims += [(hidden_dim, hidden_dim)] * (hidden_depth - 1)
        dims += [(hidden_dim, output_dim)]

    params = []
    for (fan_in, fan_out) in dims:
        key, kw, kb = jax.random.split(key, 3)
        bound = 1.0 / jnp.sqrt(jnp.float32(fan_in))
        w = jax.random.uniform(kw, (fan_out, fan_in), jnp.float32, -bound, bound)
        b = jax.random.uniform(kb, (fan_out, 1), jnp.float32, -bound, bound)
        params.append((w, b))
    return params


def gps_mlp_reference(x, divisor, params):
    """Pure-JAX reference (batch-major, PyTorch weight layout)."""
    h = x / jnp.asarray(divisor, jnp.float32).reshape(1, -1)
    for li, (w, b) in enumerate(params):
        h = h @ w.T + b.reshape(1, -1)
        if li < len(params) - 1:
            h = jnp.maximum(h, 0.0)
    return h


if __name__ == "__main__":
    hidden_dim = 32
    output_dim = 16
    hidden_depth = 2          # -> 3 linear layers total

    key = jax.random.PRNGKey(0)
    key, kp = jax.random.split(key)
    divisor = jnp.array([1000.0, 100.0, 1000.0], dtype=jnp.float32)
    params = build_mlp_params(kp, 3, hidden_dim, output_dim, hidden_depth)

    # Case 1: tiny batch (single grid step, lane-padded internally), default tile.
    key, kx = jax.random.split(key)
    x_small = jax.random.uniform(kx, (8, 3), jnp.float32, -1000.0, 1000.0)
    y_small, aux = gps_mlp_forward(x_small, divisor, params)
    y_small = jax.block_until_ready(y_small)
    assert aux is None
    assert y_small.shape == (8, output_dim)
    ref_small = gps_mlp_reference(x_small, divisor, params)
    assert jnp.allclose(y_small, ref_small, atol=1e-4, rtol=1e-5), "mismatch (small batch)"

    # Case 2: batch not divisible by tile -> exercises padding + 2 parallel grid steps.
    key, kx2 = jax.random.split(key)
    x_big = jax.random.uniform(kx2, (300, 3), jnp.float32, -1000.0, 1000.0)
    y_big, _ = gps_mlp_forward(x_big, divisor, params, batch_tile=256)
    y_big = jax.block_until_ready(y_big)
    assert y_big.shape == (300, output_dim)
    ref_big = gps_mlp_reference(x_big, divisor, params)
    assert jnp.allclose(y_big, ref_big, atol=1e-4, rtol=1e-5), "mismatch (padded batch)"

    # Case 3: feature-major fast path (zero wrapper transposes).
    yT, _ = gps_mlp_forward(jnp.transpose(x_big), divisor, params,
                            batch_tile=256, feature_major=True)
    yT = jax.block_until_ready(yT)
    assert yT.shape == (output_dim, 300)
    assert jnp.allclose(jnp.transpose(yT), ref_big, atol=1e-4, rtol=1e-5), \
        "mismatch (feature-major path)"

    # Case 4: bf16 matmul operands (f32 accumulation) -> relaxed tolerance.
    y_bf16, _ = gps_mlp_forward(x_big, divisor, params, batch_tile=256,
                                compute_dtype=jnp.bfloat16)
    y_bf16 = jax.block_until_ready(y_bf16)
    assert y_bf16.shape == (300, output_dim)
    assert jnp.allclose(y_bf16, ref_big, atol=0.25, rtol=0.05), "mismatch (bf16 compute)"

    print("KERNEL_OK")
</pallas_src>

<mosaic_0001>
module attributes {stable_mosaic.version = 11 : i64} {
  func.func @kernel(%arg0: i32, %arg1: memref<3x128xf32, #tpu.memory_space<vmem>>, %arg2: memref<32x3xf32, #tpu.memory_space<vmem>>, %arg3: memref<32x1xf32, #tpu.memory_space<vmem>>, %arg4: memref<32x32xf32, #tpu.memory_space<vmem>>, %arg5: memref<32x1xf32, #tpu.memory_space<vmem>>, %arg6: memref<16x32xf32, #tpu.memory_space<vmem>>, %arg7: memref<16x1xf32, #tpu.memory_space<vmem>>, %arg8: memref<16x128xf32, #tpu.memory_space<vmem>>) attributes {dimension_semantics = [#tpu.dimension_semantics<parallel>], iteration_bounds = array<i64: 1>, scalar_prefetch = 0 : i64, scratch_operands = 0 : i64, tpu.core_type = #tpu.core_type<tc>, window_params = [{transform_indices = @transform_0, window_bounds = array<i64: 3, 128>}, {pipeline_mode = #tpu.pipeline_mode<synchronous>, transform_indices = @transform_1, window_bounds = array<i64: 32, 3>}, {pipeline_mode = #tpu.pipeline_mode<synchronous>, transform_indices = @transform_2, window_bounds = array<i64: 32, 1>}, {pipeline_mode = #tpu.pipeline_mode<synchronous>, transform_indices = @transform_3, window_bounds = array<i64: 32, 32>}, {pipeline_mode = #tpu.pipeline_mode<synchronous>, transform_indices = @transform_4, window_bounds = array<i64: 32, 1>}, {pipeline_mode = #tpu.pipeline_mode<synchronous>, transform_indices = @transform_5, window_bounds = array<i64: 16, 32>}, {pipeline_mode = #tpu.pipeline_mode<synchronous>, transform_indices = @transform_6, window_bounds = array<i64: 16, 1>}, {transform_indices = @transform_7, window_bounds = array<i64: 16, 128>}]} {
    %c0 = arith.constant 0 : index
    %c0_0 = arith.constant 0 : index
    %0 = vector.load %arg1[%c0, %c0_0] : memref<3x128xf32, #tpu.memory_space<vmem>>, vector<3x128xf32>
    %c0_1 = arith.constant 0 : index
    %c0_2 = arith.constant 0 : index
    %1 = vector.load %arg2[%c0_1, %c0_2] : memref<32x3xf32, #tpu.memory_space<vmem>>, vector<32x3xf32>
    %c0_3 = arith.constant 0 : index
    %c0_4 = arith.constant 0 : index
    %2 = vector.load %arg3[%c0_3, %c0_4] : memref<32x1xf32, #tpu.memory_space<vmem>>, vector<32x1xf32>
    %3 = vector.extract_strided_slice %1 {offsets = [0, 0], sizes = [32, 1], strides = [1, 1]} : vector<32x3xf32> to vector<32x1xf32>
    %4 = vector.extract_strided_slice %0 {offsets = [0, 0], sizes = [1, 128], strides = [1, 1]} : vector<3x128xf32> to vector<1x128xf32>
    %5 = vector.broadcast %3 : vector<32x1xf32> to vector<32x128xf32>
    %6 = vector.broadcast %4 : vector<1x128xf32> to vector<32x128xf32>
    %7 = arith.mulf %5, %6 : vector<32x128xf32>
    %8 = vector.broadcast %2 : vector<32x1xf32> to vector<32x128xf32>
    %9 = arith.addf %8, %7 : vector<32x128xf32>
    %10 = vector.extract_strided_slice %1 {offsets = [0, 1], sizes = [32, 1], strides = [1, 1]} : vector<32x3xf32> to vector<32x1xf32>
    %11 = vector.extract_strided_slice %0 {offsets = [1, 0], sizes = [1, 128], strides = [1, 1]} : vector<3x128xf32> to vector<1x128xf32>
    %12 = vector.broadcast %10 : vector<32x1xf32> to vector<32x128xf32>
    %13 = vector.broadcast %11 : vector<1x128xf32> to vector<32x128xf32>
    %14 = arith.mulf %12, %13 : vector<32x128xf32>
    %15 = arith.addf %9, %14 : vector<32x128xf32>
    %16 = vector.extract_strided_slice %1 {offsets = [0, 2], sizes = [32, 1], strides = [1, 1]} : vector<32x3xf32> to vector<32x1xf32>
    %17 = vector.extract_strided_slice %0 {offsets = [2, 0], sizes = [1, 128], strides = [1, 1]} : vector<3x128xf32> to vector<1x128xf32>
    %18 = vector.broadcast %16 : vector<32x1xf32> to vector<32x128xf32>
    %19 = vector.broadcast %17 : vector<1x128xf32> to vector<32x128xf32>
    %20 = arith.mulf %18, %19 : vector<32x128xf32>
    %21 = arith.addf %15, %20 : vector<32x128xf32>
    %cst = arith.constant 0.000000e+00 : f32
    %22 = vector.broadcast %cst : f32 to vector<32x128xf32>
    %23 = arith.maximumf %21, %22 : vector<32x128xf32>
    %c0_5 = arith.constant 0 : index
    %c0_6 = arith.constant 0 : index
    %24 = vector.load %arg4[%c0_5, %c0_6] : memref<32x32xf32, #tpu.memory_space<vmem>>, vector<32x32xf32>
    %c0_7 = arith.constant 0 : index
    %c0_8 = arith.constant 0 : index
    %25 = vector.load %arg5[%c0_7, %c0_8] : memref<32x1xf32, #tpu.memory_space<vmem>>, vector<32x1xf32>
    %cst_9 = arith.constant dense<0.000000e+00> : vector<32x128xf32>
    %26 = tpu.matmul %24, %23, %cst_9 {dimension_numbers = #tpu.dot_dimension_numbers<[1], [0], [0], [1], [0, 0, 1, 1], [], []>} : vector<32x32xf32>, vector<32x128xf32>, vector<32x128xf32> -> vector<32x128xf32>
    %27 = vector.broadcast %25 : vector<32x1xf32> to vector<32x128xf32>
    %28 = arith.addf %26, %27 : vector<32x128xf32>
    %cst_10 = arith.constant 0.000000e+00 : f32
    %29 = vector.broadcast %cst_10 : f32 to vector<32x128xf32>
    %30 = arith.maximumf %28, %29 : vector<32x128xf32>
    %c0_11 = arith.constant 0 : index
    %c0_12 = arith.constant 0 : index
    %31 = vector.load %arg6[%c0_11, %c0_12] : memref<16x32xf32, #tpu.memory_space<vmem>>, vector<16x32xf32>
    %c0_13 = arith.constant 0 : index
    %c0_14 = arith.constant 0 : index
    %32 = vector.load %arg7[%c0_13, %c0_14] : memref<16x1xf32, #tpu.memory_space<vmem>>, vector<16x1xf32>
    %cst_15 = arith.constant dense<0.000000e+00> : vector<16x128xf32>
    %33 = tpu.matmul %31, %30, %cst_15 {dimension_numbers = #tpu.dot_dimension_numbers<[1], [0], [0], [1], [0, 0, 1, 1], [], []>} : vector<16x32xf32>, vector<32x128xf32>, vector<16x128xf32> -> vector<16x128xf32>
    %34 = vector.broadcast %32 : vector<16x1xf32> to vector<16x128xf32>
    %35 = arith.addf %33, %34 : vector<16x128xf32>
    %c0_16 = arith.constant 0 : index
    %c0_17 = arith.constant 0 : index
    %36 = vector.load %arg8[%c0_16, %c0_17] : memref<16x128xf32, #tpu.memory_space<vmem>>, vector<16x128xf32>
    tpu.vector_store %arg8[%c0_16, %c0_17], %35 {strides = array<i32>} : memref<16x128xf32, #tpu.memory_space<vmem>>, vector<16x128xf32>,
    return
  }
  func.func @transform_0(%arg0: i32) -> (i32, i32) {
    %c0_i32 = arith.constant 0 : i32
    %c0_i32_0 = arith.constant 0 : i32
    return %c0_i32, %arg0 : i32, i32
  }
  func.func @transform_1(%arg0: i32) -> (i32, i32) {
    %c0_i32 = arith.constant 0 : i32
    %c0_i32_0 = arith.constant 0 : i32
    %c0_i32_1 = arith.constant 0 : i32
    return %c0_i32, %c0_i32_0 : i32, i32
  }
  func.func @transform_2(%arg0: i32) -> (i32, i32) {
    %c0_i32 = arith.constant 0 : i32
    %c0_i32_0 = arith.constant 0 : i32
    %c0_i32_1 = arith.constant 0 : i32
    return %c0_i32, %c0_i32_0 : i32, i32
  }
  func.func @transform_3(%arg0: i32) -> (i32, i32) {
    %c0_i32 = arith.constant 0 : i32
    %c0_i32_0 = arith.constant 0 : i32
    %c0_i32_1 = arith.constant 0 : i32
    return %c0_i32, %c0_i32_0 : i32, i32
  }
  func.func @transform_4(%arg0: i32) -> (i32, i32) {
    %c0_i32 = arith.constant 0 : i32
    %c0_i32_0 = arith.constant 0 : i32
    %c0_i32_1 = arith.constant 0 : i32
    return %c0_i32, %c0_i32_0 : i32, i32
  }
  func.func @transform_5(%arg0: i32) -> (i32, i32) {
    %c0_i32 = arith.constant 0 : i32
    %c0_i32_0 = arith.constant 0 : i32
    %c0_i32_1 = arith.constant 0 : i32
    return %c0_i32, %c0_i32_0 : i32, i32
  }
  func.func @transform_6(%arg0: i32) -> (i32, i32) {
    %c0_i32 = arith.constant 0 : i32
    %c0_i32_0 = arith.constant 0 : i32
    %c0_i32_1 = arith.constant 0 : i32
    return %c0_i32, %c0_i32_0 : i32, i32
  }
  func.func @transform_7(%arg0: i32) -> (i32, i32) {
    %c0_i32 = arith.constant 0 : i32
    %c0_i32_0 = arith.constant 0 : i32
    return %c0_i32, %arg0 : i32, i32
  }
}

</mosaic_0001>

<bundles_post_ra>
// kernel: tpu_custom_call.1
= control target key start
LH: loop header
LB: loop body
LE: loop exit
PB: predicated region body
PF: predicated region fallthrough
CT: control target
= control target key end

     0   :  { %v478_v2 = vmov 1   ;;  %v479_v3 = vmov 0   ;;  %s596_s0 = inlined_call_operand.vmem [shape: f32[3,128], index: 0, kind: input, shape index: {}]   ;;  %s597_s1 = inlined_call_operand.vmem [shape: f32[32,3], index: 1, kind: input, shape index: {}]   ;;  %s598_s2 = inlined_call_operand.vmem [shape: f32[32,1], index: 2, kind: input, shape index: {}]   ;;  %s599_s3 = inlined_call_operand.vmem [shape: f32[32,32], index: 3, kind: input, shape index: {}]   ;;  %s600_s4 = inlined_call_operand.vmem [shape: f32[32,1], index: 4, kind: input, shape index: {}]   ;;  %s601_s5 = inlined_call_operand.vmem [shape: f32[16,32], index: 5, kind: input, shape index: {}]   ;;  %s602_s6 = inlined_call_operand.vmem [shape: f32[16,1], index: 6, kind: input, shape index: {}]   ;;  %s603_s7 = inlined_call_operand.hbm [shape: f32[16,128], index: 7, kind: output, shape index: {}]  }
   0x1   :  { %v35_v0 = vld [vmem:[%s598_s2 + $0x18] sm:$0xff]  ;;  %v30_v1 = vld [vmem:[%s597_s1 + $0x10] sm:$0xff]  ;;  %445 = vset.pattern.permute.xlu0 %v478_v2  ;;  %442 = vset.pattern.permute.xlu1 %v479_v3 }
   0x2   :  { %81 = vperm.xlu1 %442, %v35_v0   ;;  %97 = vperm.xlu0 %445, %v30_v1  }
   0x3   :  { %12 = vsyncpa [#allocation3], 0  ;;  %v31_v4 = vld [vmem:[%s597_s1 + $0x18] sm:$0xff]  ;;  %v34_v5 = vld [vmem:[%s598_s2 + $0x10] sm:$0xff]  ;;  %v480_v7 = vmov 2   ;;  %vm176_vm0 = vcmask 261120   ;;  %v56_v18 = vlaneseq }
   0x4   :  { %v29_v6 = vld [vmem:[%s597_s1 + $0x8] sm:$0xff]  ;;  %v28_v9 = vld [vmem:[%s597_s1] sm:$0xff]  ;;  %v155_v12 = vld [vmem:[%s600_s4 + $0x18] sm:$0xff]  ;;  %s481_s14 = smov [#allocation2]  }
   0x5   :  { %v33_v8 = vld [vmem:[%s598_s2 + $0x8] sm:$0xff]  ;;  %v32_v10 = vld [vmem:[%s598_s2] sm:$0xff]  ;;  %v154_v13 = vld [vmem:[%s600_s4 + $0x10] sm:$0xff]  ;;  %v57_v19 = vshrl.u32 %v56_v18, 7  ;;  %s380_s15 = sshll.u32 %s481_s14, 4  ;;  %s381_s15 = int_to_ptr.vmem [resolvable:$true] %s380_s15 }
   0x6   :  { %443 = vset.pattern.permute.xlu1 %v478_v2  ;;  %446 = vset.pattern.permute.xlu0 %v479_v3  ;;  %v148_v11 = vld [vmem:[%s599_s3] sm:$0xff]  ;;  %v153_v14 = vld [vmem:[%s600_s4 + $0x8] sm:$0xff]  ;;  %s456_s16 = scalar_lea.vmem %s381_s15, 256  ;;  %p461_p1 = scmp.lt.s32.totalorder %s381_s15, %s381_s15 }
   0x7   :  { %101 = vperm.xlu1 %443, %v31_v4   ;;  %53 = vperm.xlu0 %446, %v31_v4   ;;  %v280_v15 = vld [vmem:[%s602_s6] sm:$0xff]  ;;  %v281_v17 = vld [vmem:[%s602_s6 + $0x8] sm:$0xff]  ;;  %v58_v22 = vsub.s32 0, %v57_v19  ;;  %v106_v27 = vsub.s32 1, %v57_v19  ;;  %v134_v29 = vsub.s32 2, %v57_v19  ;;  %p457_p0 = scmp.ne.s32.totalorder %s381_s15, %s456_s16  ;;  %p462_p2 = scmp.lt.s32.totalorder %s456_s16, %s456_s16 }
   0x8   :  { %419 = vmatprep.mubr.msk.f32.mxu0 %vm176_vm0, %v148_v11  ;;  %v152_v16 = vld [vmem:[%s600_s4] sm:$0xff] }
   0x9   :  { %v27_v23 = vld [vmem:[%s596_s0] sm:$0x7]  ;;  %p463_p3 = por %p462_p2, %p461_p1 }
   0xa   :  { %v59_v24 = vrot.slane %v27_v23, %v58_v22  ;;  %v107_v31 = vrot.slane %v27_v23, %v106_v27  ;;  %v135_v34 = vrot.slane %v27_v23, %v134_v29  ;;  %v279_v27 = vld [vmem:[%s601_s5 + $0x8] sm:$0xff] }
   0xb   :  { %444 = vset.pattern.permute.xlu1 %v479_v3  ;;  %48 = vperm.xlu0 %446, %v30_v1   ;;  %p464_p4 = pnand %p463_p3, %p457_p0 }
   0xc   :  { %76 = vperm.xlu1 %444, %v34_v5  }
   0xf   :  { %43 = vperm.xlu0 %446, %v29_v6  }
  0x10   :  { %447 = vset.pattern.permute.xlu1 %v480_v7 }
  0x11   :  { %129 = vperm.xlu1 %447, %v31_v4  }
  0x13   :  { %71 = vperm.xlu0 %446, %v33_v8   ;;  %v150_v8 = vld [vmem:[%s599_s3 + $0x10] sm:$0xff] }
  0x15   :  { %448 = vset.pattern.permute.xlu1 %v479_v3 }
  0x16   :  { %38 = vperm.xlu1 %448, %v28_v9  }
  0x17   :  { %66 = vperm.xlu0 %446, %v32_v10   ;;  %v278_v10 = vld [vmem:[%s601_s5] sm:$0xff] }
  0x18   :  { %433 = vmatprep.mubr.msk.f32.mxu1 %vm176_vm0, %v278_v10 }
  0x1a   :  { %449 = vset.pattern.permute.xlu1 %v478_v2 }
  0x1b   :  { %93 = vperm.xlu1 %449, %v29_v6   ;;  %452 = vset.pattern.permute.xlu0 %v480_v7 }
  0x1c   :  { %121 = vperm.xlu0 %452, %v29_v6  }
  0x1f   :  { %450 = vset.pattern.permute.xlu1 %v480_v7 }
  0x20   :  { %125 = vperm.xlu1 %450, %v30_v1   ;;  %455 = vset.pattern.permute.xlu0 %v479_v3 }
  0x21   :  { %168 = vperm.xlu0 %455, %v154_v13  }
  0x24   :  { %451 = vset.pattern.permute.xlu1 %v478_v2 }
  0x25   :  { %89 = vperm.xlu1 %451, %v28_v9   ;;  %284 = vperm.xlu0 %455, %v280_v15  }
  0x29   :  { %453 = vset.pattern.permute.xlu1 %v480_v7  ;;  %v149_v7 = vld [vmem:[%s599_s3 + $0x8] sm:$0xff] }
  0x2a   :  { %117 = vperm.xlu1 %453, %v28_v9   ;;  %v151_v9 = vld [vmem:[%s599_s3 + $0x18] sm:$0xff] }
  0x2e   :  { %454 = vset.pattern.permute.xlu1 %v479_v3 }
  0x2f   :  { %173 = vperm.xlu1 %454, %v155_v12  }
  0x33   :  { %163 = vperm.xlu1 %454, %v153_v14  }
  0x37   :  { %158 = vperm.xlu1 %454, %v152_v16  }
  0x3b   :  { %289 = vperm.xlu1 %454, %v281_v17  }
  0x7d   :  { %v82_v20 = vpop.permute.xlu1 %81  ;;  %v98_v21 = vpop.permute.xlu0 %97 }
  0x7e   :  { %v110_v50 = vmul.f32 %v107_v31, %v98_v21 }
  0x82   :  { %v102_v25 = vpop.permute.xlu1 %101  ;;  %v54_v26 = vpop.permute.xlu0 %53 }
  0x83   :  { %v63_v28 = vmul.f32 %v59_v24, %v54_v26  ;;  %v111_v36 = vmul.f32 %v107_v31, %v102_v25 }
  0x85   :  { %v87_v33 = vadd.f32 %v82_v20, %v63_v28 }
  0x86   :  { %v49_v30 = vpop.permute.xlu0 %48 }
  0x87   :  { %v77_v32 = vpop.permute.xlu1 %76  ;;  %v115_v39 = vadd.f32 %v111_v36, %v87_v33  ;;  %v62_v45 = vmul.f32 %v59_v24, %v49_v30 }
  0x89   :  { %v86_v51 = vadd.f32 %v77_v32, %v62_v45 }
  0x8a   :  { %v44_v35 = vpop.permute.xlu0 %43 }
  0x8b   :  { %v61_v46 = vmul.f32 %v59_v24, %v44_v35  ;;  %v114_v56 = vadd.f32 %v110_v50, %v86_v51 }
  0x8c   :  { %v130_v37 = vpop.permute.xlu1 %129 }
  0x8d   :  { %v139_v38 = vmul.f32 %v135_v34, %v130_v37 }
  0x8e   :  { %v72_v40 = vpop.permute.xlu0 %71 }
  0x8f   :  { %v143_v41 = vadd.f32 %v139_v38, %v115_v39  ;;  %v85_v52 = vadd.f32 %v72_v40, %v61_v46 }
  0x91   :  { %v39_v42 = vpop.permute.xlu1 %38  ;;  %v147_v43 = vmax.f32 %v143_v41, 0.0 }
  0x92   :  { %v67_v44 = vpop.permute.xlu0 %66  ;;  %v60_v60 = vmul.f32 %v59_v24, %v39_v42 }
  0x93   :  { %411 = vmatprep.subr.mxu0 %v147_v43 }
  0x94   :  { %412 = vmatpush3.msra.mxu0 %v147_v43  ;;  %v84_v1 = vadd.f32 %v67_v44, %v60_v60 }
  0x96   :  { %v94_v47 = vpop.permute.xlu1 %93 }
  0x97   :  { %v109_v48 = vmul.f32 %v107_v31, %v94_v47  ;;  %v122_v49 = vpop.permute.xlu0 %121 }
  0x98   :  { %v137_v54 = vmul.f32 %v135_v34, %v122_v49 }
  0x99   :  { %v113_v53 = vadd.f32 %v109_v48, %v85_v52 }
  0x9b   :  { %v126_v55 = vpop.permute.xlu1 %125  ;;  %v141_v58 = vadd.f32 %v137_v54, %v113_v53 }
  0x9c   :  { %v138_v57 = vmul.f32 %v135_v34, %v126_v55  ;;  %v169_v17 = vpop.permute.xlu0 %168 }
  0x9d   :  { %v145_v63 = vmax.f32 %v141_v58, 0.0 }
  0x9e   :  { %v142_v59 = vadd.f32 %v138_v57, %v114_v56 }
  0xa0   :  { %v146_v61 = vmax.f32 %v142_v59, 0.0  ;;  %v90_v62 = vpop.permute.xlu1 %89 }
  0xa1   :  { %v108_v0 = vmul.f32 %v107_v31, %v90_v62  ;;  %v285_v31 = vpop.permute.xlu0 %284 }
  0xa2   :  { %413 = vmatprep.subr.mxu0 %v146_v61 }
  0xa3   :  { %414 = vmatpush3.msra.mxu0 %v146_v61  ;;  %v112_v3 = vadd.f32 %v108_v0, %v84_v1 }
  0xa4   :  { %415 = vmatprep.subr.mxu0 %v145_v63 }
  0xa5   :  { %v118_v2 = vpop.permute.xlu1 %117  ;;  %416 = vmatpush3.msra.mxu0 %v145_v63 }
  0xa6   :  { %v136_v4 = vmul.f32 %v135_v34, %v118_v2 }
  0xa8   :  { %v140_v5 = vadd.f32 %v136_v4, %v112_v3 }
  0xaa   :  { %v144_v6 = vmax.f32 %v140_v5, 0.0  ;;  %v174_v11 = vpop.permute.xlu1 %173 }
  0xac   :  { %417 = vmatprep.subr.mxu0 %v144_v6 }
  0xad   :  { %418 = vmatpush3.msra.mxu0 %v144_v6 }
  0xae   :  { %420 = vmatmul.mubr.msk.f32.vlgmr.msra.gmra.mxu0 %vm176_vm0, %v149_v7  ;;  %v164_v13 = vpop.permute.xlu1 %163 }
  0xaf   :  { %422 = vmatprep.mubr.msk.f32.mxu0 %vm176_vm0, %v150_v8 }
  0xb2   :  { %423 = vmatmul.mubr.msk.f32.gmra.mxu0 %vm176_vm0, %v151_v9  ;;  %v159_v22 = vpop.permute.xlu1 %158 }
  0xb6   :  { %v290_v28 = vpop.permute.xlu1 %289 }
 0x16e   :  { %v421_v12 = vpop.f32.mrf.mxu0 }
 0x16f   :  { %v261_v19 = vadd.f32 %v421_v12, %v164_v13 }
 0x170   :  { %v255_v14 = vpop.f32.mrf.mxu0 }
 0x171   :  { %v256_v23 = vadd.f32 %v255_v14, %v159_v22  ;;  %v275_v25 = vmax.f32 %v261_v19, 0.0 }
 0x172   :  { %v424_v15 = vpop.f32.mrf.mxu0 }
 0x173   :  { %v271_v16 = vadd.f32 %v424_v15, %v174_v11  ;;  %v274_v26 = vmax.f32 %v256_v23, 0.0 }
 0x174   :  { %v265_v18 = vpop.f32.mrf.mxu0 }
 0x175   :  { %v277_v20 = vmax.f32 %v271_v16, 0.0  ;;  %v266_v21 = vadd.f32 %v265_v18, %v169_v17 }
 0x177   :  { %v276_v24 = vmax.f32 %v266_v21, 0.0  ;;  %425 = vmatprep.subr.mxu1 %v277_v20 }
 0x178   :  { %426 = vmatpush3.msra.mxu1 %v277_v20 }
 0x179   :  { %427 = vmatprep.subr.mxu1 %v276_v24 }
 0x17a   :  { %428 = vmatpush3.msra.mxu1 %v276_v24 }
 0x17b   :  { %429 = vmatprep.subr.mxu1 %v275_v25 }
 0x17c   :  { %430 = vmatpush3.msra.mxu1 %v275_v25 }
 0x17d   :  { %431 = vmatprep.subr.mxu1 %v274_v26 }
 0x17e   :  { %432 = vmatpush3.msra.mxu1 %v274_v26 }
 0x17f   :  { %434 = vmatmul.mubr.msk.f32.vlgmr.msra.gmra.mxu1 %vm176_vm0, %v279_v27 }
 0x23f   :  { %v435_v29 = vpop.f32.mrf.mxu1 }
 0x240   :  { %v370_v30 = vadd.f32 %v435_v29, %v290_v28 }
 0x241   :  { %v364_v32 = vpop.f32.mrf.mxu1 }
 0x242   :  { %374 = vst [vmem:[#allocation2 + $0x8] sm:$0xff] %v370_v30  ;;  %v365_v33 = vadd.f32 %v364_v32, %v285_v31 }
 0x244   :  { %373 = vst [vmem:[#allocation2] sm:$0xff] %v365_v33 }
 0x245   :  { %467 = shalt.err (!%p464_p4)
}
 0x246   :  { %s482_s5 = smov 128   ;;  %s483_s17 = smov 8  }
 0x247   :  { %386 = dma.vmem_to_hbm [thread:$0]  %s381_s15, 256, %s603_s7, [#allocation3], %s482_s5, %s482_s5, %s483_s17  }
 0x248   :  { %476 = dma.done.wait [#allocation3], 256  }
 0x249   :  { %477 = vsyncadd [#allocation3], 4294967040 }
 0x24a   :  { %390 = vsyncpa [#allocation3], 1 }

</bundles_post_ra>
